<compile_context>
chip_gen: v7x
topology: tpu7x:2x2x1
jax: 0.10.0
libtpu: 0.0.40
codegen_flags: <defaults>
</compile_context>

<pallas_src>
import functools

import jax
import jax.numpy as jnp
from jax.experimental import pallas as pl
from jax.experimental.pallas import tpu as pltpu

LANE = 128          # lane width: pad all feature dims to this
SUBLANE_B = 16      # bf16 sublane packing: batch tile must be a multiple of 16


def _round_up(n, m):
    return ((n + m - 1) // m) * m


# ----------------------------------------------------------------------------
# Fused Pallas kernel: the whole MLP on one batch tile
# ----------------------------------------------------------------------------
def _mlp_kernel(*refs, n_hidden):
    """refs = (x, [w,b,scale,shift]*n_hidden, w_last, b_last, out)."""
    x_ref = refs[0]
    o_ref = refs[-1]

    h_bf16 = x_ref[...]                       # (TB, IN_pad) bf16, MXU-ready
    idx = 1
    for _ in range(n_hidden):
        w_ref, b_ref, sc_ref, sh_ref = refs[idx:idx + 4]
        idx += 4
        # MXU matmul: bf16 inputs, f32 accumulation.
        y = jnp.dot(h_bf16, w_ref[...], preferred_element_type=jnp.float32)
        y = y + b_ref[...]                    # bias (1, OUT_pad) broadcasts over rows
        # LeakyReLU (default negative_slope=0.01) in f32.
        y = jnp.where(y >= 0.0, y, 0.01 * y)
        # Folded BatchNorm1d (eval): y * gamma/sqrt(var+eps) + (beta - mean*scale)
        y = y * sc_ref[...] + sh_ref[...]
        h_bf16 = y.astype(jnp.bfloat16)       # narrow only for the next matmul

    w_ref, b_ref = refs[idx], refs[idx + 1]
    y = jnp.dot(h_bf16, w_ref[...], preferred_element_type=jnp.float32)
    o_ref[...] = (y + b_ref[...]).astype(o_ref.dtype)


# ----------------------------------------------------------------------------
# Parameter init (deterministic, mirrors the PyTorch __init__)
# ----------------------------------------------------------------------------
def init_params(key, input_feature_dim, hidden_dims, n_classes):
    """Unpadded f32 params. Hidden blocks carry a folded-BN scale/shift."""
    layer_sizes = [input_feature_dim] + list(hidden_dims)
    params = []
    for li in range(1, len(layer_sizes)):
        fan_in, fan_out = layer_sizes[li - 1], layer_sizes[li]
        key, wk = jax.random.split(key)
        bound = (6.0 / (fan_in + fan_out)) ** 0.5        # xavier_uniform
        # PyTorch weight is (out, in); we store the transpose (in, out).
        w = jax.random.uniform(wk, (fan_in, fan_out), jnp.float32, -bound, bound)
        b = jnp.zeros((1, fan_out), jnp.float32)
        gamma = jnp.ones((fan_out,), jnp.float32)
        beta = jnp.zeros((fan_out,), jnp.float32)
        running_mean = jnp.zeros((fan_out,), jnp.float32)
        running_var = jnp.ones((fan_out,), jnp.float32)
        eps = 1e-5
        scale = (gamma / jnp.sqrt(running_var + eps)).reshape(1, fan_out)
        shift = (beta - running_mean * scale[0]).reshape(1, fan_out)
        params.append(dict(w=w, b=b, scale=scale, shift=shift))
    # Final Linear (no activation / BN -> no scale/shift stored at all).
    fan_in, fan_out = layer_sizes[-1], n_classes
    key, wk = jax.random.split(key)
    bound = (6.0 / (fan_in + fan_out)) ** 0.5
    w = jax.random.uniform(wk, (fan_in, fan_out), jnp.float32, -bound, bound)
    b = jnp.zeros((1, fan_out), jnp.float32)
    params.append(dict(w=w, b=b))
    return params


def prepare_params(params):
    """Pad feature dims to multiples of 128; weights to bf16 for the MXU."""
    prepared = []
    for p in params:
        in_d, out_d = p["w"].shape
        in_p, out_p = _round_up(in_d, LANE), _round_up(out_d, LANE)
        w = jnp.zeros((in_p, out_p), jnp.bfloat16)
        w = w.at[:in_d, :out_d].set(p["w"].astype(jnp.bfloat16))
        b = jnp.zeros((1, out_p), jnp.float32).at[:, :out_d].set(p["b"])
        entry = dict(w=w, b=b)
        if "scale" in p:
            sc = jnp.zeros((1, out_p), jnp.float32).at[:, :out_d].set(p["scale"])
            sh = jnp.zeros((1, out_p), jnp.float32).at[:, :out_d].set(p["shift"])
            entry.update(scale=sc, shift=sh)
        prepared.append(entry)
    return prepared


# ----------------------------------------------------------------------------
# Single-pallas_call forward
# ----------------------------------------------------------------------------
def linear_model_forward(x, kparams, n_classes, *, tile_b=256):
    B, in_dim = x.shape
    in_pad = kparams[0]["w"].shape[0]
    out_pad = kparams[-1]["w"].shape[1]
    n_hidden = len(kparams) - 1

    # Batch tiling: multiple of 16 (bf16 sublane packing); cap at padded batch.
    tb = min(tile_b, _round_up(B, SUBLANE_B))
    b_pad = _round_up(B, tb)

    # Pad x (zeros) and cast to bf16 once in the wrapper (halves x HBM traffic).
    x_p = jnp.zeros((b_pad, in_pad), jnp.bfloat16)
    x_p = x_p.at[:B, :in_dim].set(x.astype(jnp.bfloat16))

    const_map = lambda i: (0, 0)                       # weights: VMEM-resident
    args = [x_p]
    in_specs = [pl.BlockSpec((tb, in_pad), lambda i: (i, 0))]
    for p in kparams[:-1]:
        for name in ("w", "b", "scale", "shift"):
            a = p[name]
            args.append(a)
            in_specs.append(pl.BlockSpec(a.shape, const_map))
    for name in ("w", "b"):                            # final layer: no scale/shift
        a = kparams[-1][name]
        args.append(a)
        in_specs.append(pl.BlockSpec(a.shape, const_map))

    kernel = functools.partial(_mlp_kernel, n_hidden=n_hidden)
    out = pl.pallas_call(
        kernel,
        out_shape=jax.ShapeDtypeStruct((b_pad, out_pad), jnp.float32),
        grid=(b_pad // tb,),
        in_specs=in_specs,
        out_specs=pl.BlockSpec((tb, out_pad), lambda i: (i, 0)),
        compiler_params=pltpu.CompilerParams(
            dimension_semantics=("parallel",)),        # 2 TCs split batch on v7x
    )(*args)
    return out[:B, :n_classes]


# ----------------------------------------------------------------------------
# Reference (pure JAX, f32) for a sanity check
# ----------------------------------------------------------------------------
def linear_model_ref(x, params):
    h = x
    for p in params[:-1]:
        y = h @ p["w"] + p["b"]
        y = jnp.where(y >= 0.0, y, 0.01 * y)
        h = y * p["scale"] + p["shift"]
    p = params[-1]
    return h @ p["w"] + p["b"]


if __name__ == "__main__":
    key = jax.random.PRNGKey(0)
    batch = 8
    input_feature_dim = 32
    hidden_dims = [64, 32]
    n_classes = 8

    pkey, xkey = jax.random.split(key)
    params = init_params(pkey, input_feature_dim, hidden_dims, n_classes)
    kparams = prepare_params(params)
    x = jax.random.normal(xkey, (batch, input_feature_dim), jnp.float32)

    out = linear_model_forward(x, kparams, n_classes)
    out = jax.block_until_ready(out)

    ref = linear_model_ref(x, params)
    assert out.shape == (batch, n_classes)
    # bf16 MXU inputs (f32 accumulation) vs f32 reference -> loosened tolerance.
    assert jnp.allclose(out, ref, atol=5e-2, rtol=5e-2), (
        f"max abs err {jnp.max(jnp.abs(out - ref))}")
    print("KERNEL_OK")
</pallas_src>

<mosaic_0001>
module attributes {stable_mosaic.version = 11 : i64} {
  func.func @_mlp_kernel(%arg0: i32, %arg1: memref<16x128xbf16, #tpu.memory_space<vmem>>, %arg2: memref<128x128xbf16, #tpu.memory_space<vmem>>, %arg3: memref<1x128xf32, #tpu.memory_space<vmem>>, %arg4: memref<1x128xf32, #tpu.memory_space<vmem>>, %arg5: memref<1x128xf32, #tpu.memory_space<vmem>>, %arg6: memref<128x128xbf16, #tpu.memory_space<vmem>>, %arg7: memref<1x128xf32, #tpu.memory_space<vmem>>, %arg8: memref<1x128xf32, #tpu.memory_space<vmem>>, %arg9: memref<1x128xf32, #tpu.memory_space<vmem>>, %arg10: memref<128x128xbf16, #tpu.memory_space<vmem>>, %arg11: memref<1x128xf32, #tpu.memory_space<vmem>>, %arg12: memref<16x128xf32, #tpu.memory_space<vmem>>) attributes {dimension_semantics = [#tpu.dimension_semantics<parallel>], iteration_bounds = array<i64: 1>, scalar_prefetch = 0 : i64, scratch_operands = 0 : i64, tpu.core_type = #tpu.core_type<tc>, window_params = [{transform_indices = @transform_0, window_bounds = array<i64: 16, 128>}, {pipeline_mode = #tpu.pipeline_mode<synchronous>, transform_indices = @transform_1, window_bounds = array<i64: 128, 128>}, {pipeline_mode = #tpu.pipeline_mode<synchronous>, transform_indices = @transform_2, window_bounds = array<i64: 1, 128>}, {pipeline_mode = #tpu.pipeline_mode<synchronous>, transform_indices = @transform_3, window_bounds = array<i64: 1, 128>}, {pipeline_mode = #tpu.pipeline_mode<synchronous>, transform_indices = @transform_4, window_bounds = array<i64: 1, 128>}, {pipeline_mode = #tpu.pipeline_mode<synchronous>, transform_indices = @transform_5, window_bounds = array<i64: 128, 128>}, {pipeline_mode = #tpu.pipeline_mode<synchronous>, transform_indices = @transform_6, window_bounds = array<i64: 1, 128>}, {pipeline_mode = #tpu.pipeline_mode<synchronous>, transform_indices = @transform_7, window_bounds = array<i64: 1, 128>}, {pipeline_mode = #tpu.pipeline_mode<synchronous>, transform_indices = @transform_8, window_bounds = array<i64: 1, 128>}, {pipeline_mode = #tpu.pipeline_mode<synchronous>, transform_indices = @transform_9, window_bounds = array<i64: 128, 128>}, {pipeline_mode = #tpu.pipeline_mode<synchronous>, transform_indices = @transform_10, window_bounds = array<i64: 1, 128>}, {transform_indices = @transform_11, window_bounds = array<i64: 16, 128>}]} {
    %c0 = arith.constant 0 : index
    %c0_0 = arith.constant 0 : index
    %0 = vector.load %arg1[%c0, %c0_0] : memref<16x128xbf16, #tpu.memory_space<vmem>>, vector<16x128xbf16>
    %c0_1 = arith.constant 0 : index
    %c0_2 = arith.constant 0 : index
    %1 = vector.load %arg2[%c0_1, %c0_2] : memref<128x128xbf16, #tpu.memory_space<vmem>>, vector<128x128xbf16>
    %cst = arith.constant dense<0.000000e+00> : vector<16x128xf32>
    %2 = tpu.matmul %0, %1, %cst {dimension_numbers = #tpu.dot_dimension_numbers<[1], [0], [0], [1], [0, 0, 1, 1], [], []>} : vector<16x128xbf16>, vector<128x128xbf16>, vector<16x128xf32> -> vector<16x128xf32>
    %c0_3 = arith.constant 0 : index
    %c0_4 = arith.constant 0 : index
    %3 = vector.load %arg3[%c0_3, %c0_4] : memref<1x128xf32, #tpu.memory_space<vmem>>, vector<1x128xf32>
    %4 = vector.broadcast %3 : vector<1x128xf32> to vector<16x128xf32>
    %5 = arith.addf %2, %4 : vector<16x128xf32>
    %cst_5 = arith.constant 0.000000e+00 : f32
    %6 = vector.broadcast %cst_5 : f32 to vector<16x128xf32>
    %7 = arith.cmpf oge, %5, %6 : vector<16x128xf32>
    %cst_6 = arith.constant 0.00999999977 : f32
    %8 = vector.broadcast %cst_6 : f32 to vector<16x128xf32>
    %9 = arith.mulf %8, %5 : vector<16x128xf32>
    %10 = arith.select %7, %5, %9 : vector<16x128xi1>, vector<16x128xf32>
    %c0_7 = arith.constant 0 : index
    %c0_8 = arith.constant 0 : index
    %11 = vector.load %arg4[%c0_7, %c0_8] : memref<1x128xf32, #tpu.memory_space<vmem>>, vector<1x128xf32>
    %12 = vector.broadcast %11 : vector<1x128xf32> to vector<16x128xf32>
    %13 = arith.mulf %10, %12 : vector<16x128xf32>
    %c0_9 = arith.constant 0 : index
    %c0_10 = arith.constant 0 : index
    %14 = vector.load %arg5[%c0_9, %c0_10] : memref<1x128xf32, #tpu.memory_space<vmem>>, vector<1x128xf32>
    %15 = vector.broadcast %14 : vector<1x128xf32> to vector<16x128xf32>
    %16 = arith.addf %13, %15 : vector<16x128xf32>
    %17 = arith.truncf %16 : vector<16x128xf32> to vector<16x128xbf16>
    %c0_11 = arith.constant 0 : index
    %c0_12 = arith.constant 0 : index
    %18 = vector.load %arg6[%c0_11, %c0_12] : memref<128x128xbf16, #tpu.memory_space<vmem>>, vector<128x128xbf16>
    %cst_13 = arith.constant dense<0.000000e+00> : vector<16x128xf32>
    %19 = tpu.matmul %17, %18, %cst_13 {dimension_numbers = #tpu.dot_dimension_numbers<[1], [0], [0], [1], [0, 0, 1, 1], [], []>} : vector<16x128xbf16>, vector<128x128xbf16>, vector<16x128xf32> -> vector<16x128xf32>
    %c0_14 = arith.constant 0 : index
    %c0_15 = arith.constant 0 : index
    %20 = vector.load %arg7[%c0_14, %c0_15] : memref<1x128xf32, #tpu.memory_space<vmem>>, vector<1x128xf32>
    %21 = vector.broadcast %20 : vector<1x128xf32> to vector<16x128xf32>
    %22 = arith.addf %19, %21 : vector<16x128xf32>
    %cst_16 = arith.constant 0.000000e+00 : f32
    %23 = vector.broadcast %cst_16 : f32 to vector<16x128xf32>
    %24 = arith.cmpf oge, %22, %23 : vector<16x128xf32>
    %cst_17 = arith.constant 0.00999999977 : f32
    %25 = vector.broadcast %cst_17 : f32 to vector<16x128xf32>
    %26 = arith.mulf %25, %22 : vector<16x128xf32>
    %27 = arith.select %24, %22, %26 : vector<16x128xi1>, vector<16x128xf32>
    %c0_18 = arith.constant 0 : index
    %c0_19 = arith.constant 0 : index
    %28 = vector.load %arg8[%c0_18, %c0_19] : memref<1x128xf32, #tpu.memory_space<vmem>>, vector<1x128xf32>
    %29 = vector.broadcast %28 : vector<1x128xf32> to vector<16x128xf32>
    %30 = arith.mulf %27, %29 : vector<16x128xf32>
    %c0_20 = arith.constant 0 : index
    %c0_21 = arith.constant 0 : index
    %31 = vector.load %arg9[%c0_20, %c0_21] : memref<1x128xf32, #tpu.memory_space<vmem>>, vector<1x128xf32>
    %32 = vector.broadcast %31 : vector<1x128xf32> to vector<16x128xf32>
    %33 = arith.addf %30, %32 : vector<16x128xf32>
    %34 = arith.truncf %33 : vector<16x128xf32> to vector<16x128xbf16>
    %c0_22 = arith.constant 0 : index
    %c0_23 = arith.constant 0 : index
    %35 = vector.load %arg10[%c0_22, %c0_23] : memref<128x128xbf16, #tpu.memory_space<vmem>>, vector<128x128xbf16>
    %cst_24 = arith.constant dense<0.000000e+00> : vector<16x128xf32>
    %36 = tpu.matmul %34, %35, %cst_24 {dimension_numbers = #tpu.dot_dimension_numbers<[1], [0], [0], [1], [0, 0, 1, 1], [], []>} : vector<16x128xbf16>, vector<128x128xbf16>, vector<16x128xf32> -> vector<16x128xf32>
    %c0_25 = arith.constant 0 : index
    %c0_26 = arith.constant 0 : index
    %37 = vector.load %arg11[%c0_25, %c0_26] : memref<1x128xf32, #tpu.memory_space<vmem>>, vector<1x128xf32>
    %38 = vector.broadcast %37 : vector<1x128xf32> to vector<16x128xf32>
    %39 = arith.addf %36, %38 : vector<16x128xf32>
    %c0_27 = arith.constant 0 : index
    %c0_28 = arith.constant 0 : index
    %40 = vector.load %arg12[%c0_27, %c0_28] : memref<16x128xf32, #tpu.memory_space<vmem>>, vector<16x128xf32>
    tpu.vector_store %arg12[%c0_27, %c0_28], %39 {strides = array<i32>} : memref<16x128xf32, #tpu.memory_space<vmem>>, vector<16x128xf32>,
    return
  }
  func.func @transform_0(%arg0: i32) -> (i32, i32) {
    %c0_i32 = arith.constant 0 : i32
    %c0_i32_0 = arith.constant 0 : i32
    return %arg0, %c0_i32 : i32, i32
  }
  func.func @transform_1(%arg0: i32) -> (i32, i32) {
    %c0_i32 = arith.constant 0 : i32
    %c0_i32_0 = arith.constant 0 : i32
    %c0_i32_1 = arith.constant 0 : i32
    return %c0_i32, %c0_i32_0 : i32, i32
  }
  func.func @transform_2(%arg0: i32) -> (i32, i32) {
    %c0_i32 = arith.constant 0 : i32
    %c0_i32_0 = arith.constant 0 : i32
    %c0_i32_1 = arith.constant 0 : i32
    return %c0_i32, %c0_i32_0 : i32, i32
  }
  func.func @transform_3(%arg0: i32) -> (i32, i32) {
    %c0_i32 = arith.constant 0 : i32
    %c0_i32_0 = arith.constant 0 : i32
    %c0_i32_1 = arith.constant 0 : i32
    return %c0_i32, %c0_i32_0 : i32, i32
  }
  func.func @transform_4(%arg0: i32) -> (i32, i32) {
    %c0_i32 = arith.constant 0 : i32
    %c0_i32_0 = arith.constant 0 : i32
    %c0_i32_1 = arith.constant 0 : i32
    return %c0_i32, %c0_i32_0 : i32, i32
  }
  func.func @transform_5(%arg0: i32) -> (i32, i32) {
    %c0_i32 = arith.constant 0 : i32
    %c0_i32_0 = arith.constant 0 : i32
    %c0_i32_1 = arith.constant 0 : i32
    return %c0_i32, %c0_i32_0 : i32, i32
  }
  func.func @transform_6(%arg0: i32) -> (i32, i32) {
    %c0_i32 = arith.constant 0 : i32
    %c0_i32_0 = arith.constant 0 : i32
    %c0_i32_1 = arith.constant 0 : i32
    return %c0_i32, %c0_i32_0 : i32, i32
  }
  func.func @transform_7(%arg0: i32) -> (i32, i32) {
    %c0_i32 = arith.constant 0 : i32
    %c0_i32_0 = arith.constant 0 : i32
    %c0_i32_1 = arith.constant 0 : i32
    return %c0_i32, %c0_i32_0 : i32, i32
  }
  func.func @transform_8(%arg0: i32) -> (i32, i32) {
    %c0_i32 = arith.constant 0 : i32
    %c0_i32_0 = arith.constant 0 : i32
    %c0_i32_1 = arith.constant 0 : i32
    return %c0_i32, %c0_i32_0 : i32, i32
  }
  func.func @transform_9(%arg0: i32) -> (i32, i32) {
    %c0_i32 = arith.constant 0 : i32
    %c0_i32_0 = arith.constant 0 : i32
    %c0_i32_1 = arith.constant 0 : i32
    return %c0_i32, %c0_i32_0 : i32, i32
  }
  func.func @transform_10(%arg0: i32) -> (i32, i32) {
    %c0_i32 = arith.constant 0 : i32
    %c0_i32_0 = arith.constant 0 : i32
    %c0_i32_1 = arith.constant 0 : i32
    return %c0_i32, %c0_i32_0 : i32, i32
  }
  func.func @transform_11(%arg0: i32) -> (i32, i32) {
    %c0_i32 = arith.constant 0 : i32
    %c0_i32_0 = arith.constant 0 : i32
    return %arg0, %c0_i32 : i32, i32
  }
}

</mosaic_0001>

<bundles_post_ra>
// kernel: tpu_custom_call.1
= control target key start
LH: loop header
LB: loop body
LE: loop exit
PB: predicated region body
PF: predicated region fallthrough
CT: control target
= control target key end

     0   :  { %16 = vsyncpa [#allocation3], 0  ;;  %s991_s0 = inlined_call_operand.hbm [shape: bf16[16,128], index: 0, kind: input, shape index: {}]   ;;  %s992_s1 = inlined_call_operand.hbm [shape: bf16[128,128], index: 1, kind: input, shape index: {}]   ;;  %s993_s2 = inlined_call_operand.vmem [shape: f32[1,128], index: 2, kind: input, shape index: {}]   ;;  %s994_s3 = inlined_call_operand.vmem [shape: f32[1,128], index: 3, kind: input, shape index: {}]   ;;  %s995_s4 = inlined_call_operand.vmem [shape: f32[1,128], index: 4, kind: input, shape index: {}]   ;;  %s996_s5 = inlined_call_operand.hbm [shape: bf16[128,128], index: 5, kind: input, shape index: {}]   ;;  %s997_s6 = inlined_call_operand.vmem [shape: f32[1,128], index: 6, kind: input, shape index: {}]   ;;  %s998_s7 = inlined_call_operand.vmem [shape: f32[1,128], index: 7, kind: input, shape index: {}]   ;;  %s999_s8 = inlined_call_operand.vmem [shape: f32[1,128], index: 8, kind: input, shape index: {}]   ;;  %s1000_s9 = inlined_call_operand.hbm [shape: bf16[128,128], index: 9, kind: input, shape index: {}]   ;;  %s1001_s10 = inlined_call_operand.vmem [shape: f32[1,128], index: 10, kind: input, shape index: {}]   ;;  %s1002_s11 = inlined_call_operand.hbm [shape: f32[16,128], index: 11, kind: output, shape index: {}]  }
   0x1   :  { %17 = vsyncpa [#allocation6], 0 }
   0x2   :  { %18 = vsyncpa [#allocation9], 0 }
   0x3   :  { %19 = vsyncpa [#allocation4], 0  ;;  %s783_s17 = smov [#allocation5]   ;;  %s784_s19 = smov [#allocation2]  }
   0x4   :  { %s37_s18 = sshll.u32 %s783_s17, 4  ;;  %s25_s20 = sshll.u32 %s784_s19, 4  ;;  %s38_s18 = int_to_ptr.vmem [resolvable:$true] %s37_s18  ;;  %s854_s20 = int_to_ptr.vmem [resolvable:$true] %s25_s20 }
   0x5   :  { %s665_s23 = scalar_lea.hbm %s992_s1, 1024 }
   0x6   :  { %p666_p0 = scmp.ne.s32.totalorder %s992_s1, %s665_s23  ;;  %p669_p1 = scmp.lt.u32.totalorder %s665_s23, %s992_s1 }
   0x8   :  { %p671_p2 = pnand %p669_p1, %p666_p0 }
   0xa   :  { %674 = shalt.err (!%p671_p2)
}
   0xb   :  { %s675_s28 = scalar_lea.vmem %s38_s18, 1024  ;;  %p680_p4 = scmp.lt.s32.totalorder %s38_s18, %s38_s18 }
   0xc   :  { %p676_p3 = scmp.ne.s32.totalorder %s38_s18, %s675_s28  ;;  %p681_p5 = scmp.lt.s32.totalorder %s675_s28, %s675_s28 }
   0xe   :  { %p682_p6 = por %p681_p5, %p680_p4 }
  0x10   :  { %p683_p7 = pnand %p682_p6, %p676_p3 }
  0x12   :  { %686 = shalt.err (!%p683_p7)
}
  0x13   :  { %s785_s29 = smov 64   ;;  %s786_s30 = smov 4  }
  0x14   :  { %43 = dma.hbm_to_vmem [thread:$0]  %s992_s1, 1024, %s38_s18, [#allocation6], %s785_s29, %s785_s29, %s786_s30  }
  0x15   :  { %s687_s16 = scalar_lea.hbm %s991_s0, 128 }
  0x16   :  { %p688_p8 = scmp.ne.s32.totalorder %s991_s0, %s687_s16  ;;  %p691_p9 = scmp.lt.u32.totalorder %s687_s16, %s991_s0 }
  0x18   :  { %p693_p10 = pnand %p691_p9, %p688_p8 }
  0x1a   :  { %696 = shalt.err (!%p693_p10)
}
  0x1b   :  { %s697_s23 = scalar_lea.vmem %s854_s20, 128  ;;  %p702_p12 = scmp.lt.s32.totalorder %s854_s20, %s854_s20 }
  0x1c   :  { %p698_p11 = scmp.ne.s32.totalorder %s854_s20, %s697_s23  ;;  %p703_p13 = scmp.lt.s32.totalorder %s697_s23, %s697_s23 }
  0x1e   :  { %p704_p0 = por %p703_p13, %p702_p12 }
  0x20   :  { %p705_p1 = pnand %p704_p0, %p698_p11 }
  0x22   :  { %708 = shalt.err (!%p705_p1)
}
  0x23   :  { %31 = dma.hbm_to_vmem [thread:$0]  %s991_s0, 128, %s854_s20, [#allocation3], %s785_s29, %s785_s29, %s786_s30  }
  0x24   :  { %s787_s24 = smov [#allocation7]   ;;  %s788_s26 = smov [#allocation8]  }
  0x25   :  { %s55_s25 = sshll.u32 %s787_s24, 4  ;;  %s73_s27 = sshll.u32 %s788_s26, 4  ;;  %s56_s25 = int_to_ptr.vmem [resolvable:$true] %s55_s25  ;;  %s891_s27 = int_to_ptr.vmem [resolvable:$true] %s73_s27 }
  0x26   :  { %s709_s13 = scalar_lea.hbm %s996_s5, 1024 }
  0x27   :  { %p710_p2 = scmp.ne.s32.totalorder %s996_s5, %s709_s13  ;;  %p713_p3 = scmp.lt.u32.totalorder %s709_s13, %s996_s5 }
  0x29   :  { %p715_p4 = pnand %p713_p3, %p710_p2 }
  0x2b   :  { %718 = shalt.err (!%p715_p4)
}
  0x2c   :  { %s719_s0 = scalar_lea.vmem %s56_s25, 1024  ;;  %p724_p6 = scmp.lt.s32.totalorder %s56_s25, %s56_s25 }
  0x2d   :  { %p720_p5 = scmp.ne.s32.totalorder %s56_s25, %s719_s0  ;;  %p725_p7 = scmp.lt.s32.totalorder %s719_s0, %s719_s0 }
  0x2f   :  { %p726_p8 = por %p725_p7, %p724_p6 }
  0x31   :  { %p727_p9 = pnand %p726_p8, %p720_p5 }
  0x33   :  { %730 = shalt.err (!%p727_p9)
}
  0x34   :  { %61 = dma.hbm_to_vmem [thread:$0]  %s996_s5, 1024, %s56_s25, [#allocation6], %s785_s29, %s785_s29, %s786_s30  }
  0x35   :  { %s731_s23 = scalar_lea.hbm %s1000_s9, 1024 }
  0x36   :  { %p732_p10 = scmp.ne.s32.totalorder %s1000_s9, %s731_s23  ;;  %p735_p11 = scmp.lt.u32.totalorder %s731_s23, %s1000_s9 }
  0x38   :  { %p737_p12 = pnand %p735_p11, %p732_p10 }
  0x3a   :  { %740 = shalt.err (!%p737_p12)
}
  0x3b   :  { %s741_s28 = scalar_lea.vmem %s891_s27, 1024  ;;  %p746_p0 = scmp.lt.s32.totalorder %s891_s27, %s891_s27 }
  0x3c   :  { %p742_p13 = scmp.ne.s32.totalorder %s891_s27, %s741_s28  ;;  %p747_p1 = scmp.lt.s32.totalorder %s741_s28, %s741_s28 }
  0x3e   :  { %p748_p2 = por %p747_p1, %p746_p0 }
  0x40   :  { %p749_p3 = pnand %p748_p2, %p742_p13 }
  0x42   :  { %752 = shalt.err (!%p749_p3)
}
  0x43   :  { %79 = dma.hbm_to_vmem [thread:$0]  %s1000_s9, 1024, %s891_s27, [#allocation9], %s785_s29, %s785_s29, %s786_s30  }
  0x44   :  { %775 = dma.done.wait [#allocation3], 128  }
  0x45   :  { %776 = vsyncadd [#allocation3], 4294967168 }
  0x46   :  { %777 = dma.done.wait [#allocation6], 2048  }
  0x47   :  { %778 = vsyncadd [#allocation6], 4294965248 }
  0x48   :  { %779 = dma.done.wait [#allocation9], 1024  }
  0x49   :  { %780 = vsyncadd [#allocation9], 4294966272  ;;  %v789_v0 = vmov 0.0   ;;  %vm790_vm0 = vmmov 0   ;;  %v640_v1 = vld [vmem:[#allocation5] sm:$0xff]   ;;  %v641_v2 = vld [vmem:[#allocation5 + $0x8] sm:$0xff]  }
  0x4a   :  { %569 = vmatprep.subr.bf16.mxu0 %v789_v0  ;;  %585 = vmatprep.mubr.msk.bf16.mxu0 %vm790_vm0, %v789_v0  ;;  %v642_v3 = vld [vmem:[#allocation5 + $0x10] sm:$0xff]   ;;  %v649_v4 = vld [vmem:[#allocation7] sm:$0xff]   ;;  %v643_v5 = vld [vmem:[#allocation5 + $0x18] sm:$0xff]  }
  0x4b   :  { %589 = vmatprep.subr.bf16.mxu1 %v789_v0  ;;  %605 = vmatprep.mubr.msk.bf16.mxu1 %vm790_vm0, %v789_v0  ;;  %v650_v6 = vld [vmem:[#allocation7 + $0x8] sm:$0xff]   ;;  %v644_v7 = vld [vmem:[#allocation5 + $0x20] sm:$0xff]   ;;  %v651_v8 = vld [vmem:[#allocation7 + $0x10] sm:$0xff]  }
  0x4c   :  { %570 = vmatpush3.bf16.msra.mxu0 %v640_v1  ;;  %590 = vmatpush3.bf16.msra.mxu1 %v649_v4  ;;  %v645_v9 = vld [vmem:[#allocation5 + $0x28] sm:$0xff]   ;;  %v652_v10 = vld [vmem:[#allocation7 + $0x18] sm:$0xff]   ;;  %v646_v11 = vld [vmem:[#allocation5 + $0x30] sm:$0xff]  }
  0x4d   :  { %571 = vmatprep.subr.bf16.mxu0 %v789_v0  ;;  %591 = vmatprep.subr.bf16.mxu1 %v789_v0  ;;  %v653_v12 = vld [vmem:[#allocation7 + $0x20] sm:$0xff]   ;;  %v647_v13 = vld [vmem:[#allocation5 + $0x38] sm:$0xff]   ;;  %v654_v15 = vld [vmem:[#allocation7 + $0x28] sm:$0xff]  }
  0x4e   :  { %v648_v14 = vld [vmem:[#allocation2] sm:$0xff]   ;;  %v655_v16 = vld [vmem:[#allocation7 + $0x30] sm:$0xff]   ;;  %v657_v18 = vld [vmem:[#allocation8] sm:$0xff]  }
  0x4f   :  { %v656_v17 = vld [vmem:[#allocation7 + $0x38] sm:$0xff]   ;;  %v658_v19 = vld [vmem:[#allocation8 + $0x8] sm:$0xff]   ;;  %v659_v20 = vld [vmem:[#allocation8 + $0x10] sm:$0xff]  }
  0x50   :  { %572 = vmatpush3.bf16.msra.mxu0 %v641_v2  ;;  %592 = vmatpush3.bf16.msra.mxu1 %v650_v6  ;;  %v660_v21 = vld [vmem:[#allocation8 + $0x18] sm:$0xff]   ;;  %v661_v22 = vld [vmem:[#allocation8 + $0x20] sm:$0xff]   ;;  %v662_v41 = vld [vmem:[#allocation8 + $0x28] sm:$0xff]  }
  0x51   :  { %573 = vmatprep.subr.bf16.mxu0 %v789_v0  ;;  %593 = vmatprep.subr.bf16.mxu1 %v789_v0  ;;  %v510_v23 = vld [vmem:[%s993_s2] ss:$0 sm:$0xff]  ;;  %v663_v42 = vld [vmem:[#allocation8 + $0x30] sm:$0xff]  }
  0x52   :  { %v520_v29 = vld [vmem:[%s994_s3] ss:$0 sm:$0xff] }
  0x53   :  { %v521_v36 = vld [vmem:[%s995_s4] ss:$0 sm:$0xff] }
  0x54   :  { %574 = vmatpush3.bf16.msra.mxu0 %v642_v3  ;;  %594 = vmatpush3.bf16.msra.mxu1 %v651_v8  ;;  %v664_v43 = vld [vmem:[#allocation8 + $0x38] sm:$0xff]  }
  0x55   :  { %575 = vmatprep.subr.bf16.mxu0 %v789_v0  ;;  %595 = vmatprep.subr.bf16.mxu1 %v789_v0  ;;  %v522_v44 = vld [vmem:[%s997_s6] ss:$0 sm:$0xff] }
  0x56   :  { %v531_v50 = vld [vmem:[%s998_s7] ss:$0 sm:$0xff]  ;;  %s791_s7 = smov [#allocation10]  }
  0x57   :  { %v532_v56 = vld [vmem:[%s999_s8] ss:$0 sm:$0xff]  ;;  %s496_s0 = sshll.u32 %s791_s7, 4  ;;  %s497_s0 = int_to_ptr.vmem [resolvable:$true] %s496_s0 }
  0x58   :  { %576 = vmatpush3.bf16.msra.mxu0 %v643_v5  ;;  %596 = vmatpush3.bf16.msra.mxu1 %v652_v10  ;;  %v533_v62 = vld [vmem:[%s1001_s10] ss:$0 sm:$0xff]  ;;  %s753_s8 = scalar_lea.vmem %s497_s0, 256  ;;  %p758_p5 = scmp.lt.s32.totalorder %s497_s0, %s497_s0 }
  0x59   :  { %577 = vmatprep.subr.bf16.mxu0 %v789_v0  ;;  %597 = vmatprep.subr.bf16.mxu1 %v789_v0  ;;  %p754_p4 = scmp.ne.s32.totalorder %s497_s0, %s753_s8  ;;  %p759_p6 = scmp.lt.s32.totalorder %s753_s8, %s753_s8 }
  0x5b   :  { %p760_p7 = por %p759_p6, %p758_p5 }
  0x5c   :  { %578 = vmatpush3.bf16.msra.mxu0 %v644_v7  ;;  %598 = vmatpush3.bf16.msra.mxu1 %v653_v12 }
  0x5d   :  { %579 = vmatprep.subr.bf16.mxu0 %v789_v0  ;;  %599 = vmatprep.subr.bf16.mxu1 %v789_v0  ;;  %p761_p8 = pnand %p760_p7, %p754_p4 }
  0x60   :  { %580 = vmatpush3.bf16.msra.mxu0 %v645_v9  ;;  %600 = vmatpush3.bf16.msra.mxu1 %v654_v15 }
  0x61   :  { %581 = vmatprep.subr.bf16.mxu0 %v789_v0  ;;  %601 = vmatprep.subr.bf16.mxu1 %v789_v0 }
  0x64   :  { %582 = vmatpush3.bf16.msra.mxu0 %v646_v11  ;;  %602 = vmatpush3.bf16.msra.mxu1 %v655_v16 }
  0x65   :  { %583 = vmatprep.subr.bf16.mxu0 %v789_v0  ;;  %603 = vmatprep.subr.bf16.mxu1 %v789_v0 }
  0x68   :  { %584 = vmatpush3.bf16.msra.mxu0 %v647_v13  ;;  %604 = vmatpush3.bf16.msra.mxu1 %v656_v17 }
  0x69   :  { %609 = vmatprep.subr.bf16.mxu0 %v789_v0 }
  0x6b   :  { %586 = vmatmul.mubr.bf16.vlgmr.msra.gmra.mrb[0].mxu0 %v648_v14 }
  0x6c   :  { %625 = vmatprep.mubr.msk.bf16.mxu0 %vm790_vm0, %v789_v0  ;;  %610 = vmatpush3.bf16.msra.mxu0 %v657_v18 }
  0x6d   :  { %611 = vmatprep.subr.bf16.mxu0 %v789_v0 }
  0x70   :  { %612 = vmatpush3.bf16.msra.mxu0 %v658_v19 }
  0x71   :  { %613 = vmatprep.subr.bf16.mxu0 %v789_v0 }
  0x74   :  { %614 = vmatpush3.bf16.msra.mxu0 %v659_v20 }
  0x75   :  { %615 = vmatprep.subr.bf16.mxu0 %v789_v0 }
  0x78   :  { %616 = vmatpush3.bf16.msra.mxu0 %v660_v21 }
  0x79   :  { %617 = vmatprep.subr.bf16.mxu0 %v789_v0 }
  0x7c   :  { %618 = vmatpush3.bf16.msra.mxu0 %v661_v22 }
  0x7d   :  { %619 = vmatprep.subr.bf16.mxu0 %v789_v0 }
  0x80   :  { %620 = vmatpush3.bf16.msra.mxu0 %v662_v41 }
  0x81   :  { %621 = vmatprep.subr.bf16.mxu0 %v789_v0 }
  0x84   :  { %622 = vmatpush3.bf16.msra.mxu0 %v663_v42 }
  0x85   :  { %623 = vmatprep.subr.bf16.mxu0 %v789_v0 }
  0x88   :  { %624 = vmatpush3.bf16.msra.mxu0 %v664_v43 }
 0x13e   :  { %v208_v24 = vpop.f32.mrb[0].mxu0 }
 0x13f   :  { %v209_v25 = vadd.f32 %v510_v23, %v208_v24  ;;  %v587_v26 = vpop.f32.mrb[1].mxu0 }
 0x140   :  { %v211_v27 = vpop.f32.mrb[2].mxu0 }
 0x141   :  { %vm215_vm1 = vcmp.ge.f32.partialorder %v209_v25, 0.0  ;;  %v217_v28 = vmul.f32 0.01, %v209_v25  ;;  %v212_v30 = vadd.f32 %v510_v23, %v211_v27  ;;  %v588_v31 = vpop.f32.mrb[3].mxu0 }
 0x143   :  { %v219_v32 = vsel %vm215_vm1, %v209_v25, %v217_v28  ;;  %vm216_vm2 = vcmp.ge.f32.partialorder %v212_v30, 0.0  ;;  %v218_v33 = vmul.f32 0.01, %v212_v30 }
 0x144   :  { %v228_v34 = vmul.f32 %v520_v29, %v219_v32 }
 0x145   :  { %v220_v35 = vsel %vm216_vm2, %v212_v30, %v218_v33 }
 0x146   :  { %v229_v37 = vmul.f32 %v520_v29, %v220_v35  ;;  %v237_v38 = vadd.f32 %v521_v36, %v228_v34 }
 0x148   :  { %v238_v39 = vadd.f32 %v521_v36, %v229_v37 }
 0x14a   :  { %v239_v40 = vpack.c.bf16 %v238_v39, %v237_v38 }
 0x14c   :  { %606 = vmatmul.mubr.bf16.vlgmr.msra.gmra.mrb[0].mxu1 %v239_v40 }
 0x21f   :  { %v345_v45 = vpop.f32.mrb[0].mxu1 }
 0x220   :  { %v346_v46 = vadd.f32 %v522_v44, %v345_v45  ;;  %v607_v47 = vpop.f32.mrb[1].mxu1 }
 0x221   :  { %v348_v48 = vpop.f32.mrb[2].mxu1 }
 0x222   :  { %vm352_vm3 = vcmp.ge.f32.partialorder %v346_v46, 0.0  ;;  %v354_v49 = vmul.f32 0.01, %v346_v46  ;;  %v349_v51 = vadd.f32 %v522_v44, %v348_v48  ;;  %v608_v52 = vpop.f32.mrb[3].mxu1 }
 0x224   :  { %v356_v53 = vsel %vm352_vm3, %v346_v46, %v354_v49  ;;  %vm353_vm4 = vcmp.ge.f32.partialorder %v349_v51, 0.0  ;;  %v355_v54 = vmul.f32 0.01, %v349_v51 }
 0x225   :  { %v365_v55 = vmul.f32 %v531_v50, %v356_v53 }
 0x226   :  { %v357_v57 = vsel %vm353_vm4, %v349_v51, %v355_v54 }
 0x227   :  { %v366_v58 = vmul.f32 %v531_v50, %v357_v57  ;;  %v374_v59 = vadd.f32 %v532_v56, %v365_v55 }
 0x229   :  { %v375_v60 = vadd.f32 %v532_v56, %v366_v58 }
 0x22b   :  { %v376_v61 = vpack.c.bf16 %v375_v60, %v374_v59 }
 0x22d   :  { %626 = vmatmul.mubr.bf16.vlgmr.msra.gmra.mrb[4].mxu0 %v376_v61 }
 0x300   :  { %v482_v63 = vpop.f32.mrb[4].mxu0 }
 0x301   :  { %v483_v0 = vadd.f32 %v533_v62, %v482_v63  ;;  %v627_v1 = vpop.f32.mrb[5].mxu0 }
 0x302   :  { %v485_v2 = vpop.f32.mrb[6].mxu0 }
 0x303   :  { %489 = vst [vmem:[#allocation10] sm:$0xff] %v483_v0  ;;  %v486_v3 = vadd.f32 %v533_v62, %v485_v2  ;;  %v628_v4 = vpop.f32.mrb[7].mxu0 }
 0x305   :  { %490 = vst [vmem:[#allocation10 + $0x8] sm:$0xff] %v486_v3 }
 0x306   :  { %764 = shalt.err (!%p761_p8)
}
 0x307   :  { %s765_s19 = scalar_lea.hbm %s1002_s11, 256 }
 0x308   :  { %p766_p9 = scmp.ne.s32.totalorder %s1002_s11, %s765_s19  ;;  %p769_p10 = scmp.lt.u32.totalorder %s765_s19, %s1002_s11 }
 0x30a   :  { %p771_p11 = pnand %p769_p10, %p766_p9 }
 0x30c   :  { %774 = shalt.err (!%p771_p11)
}
 0x30d   :  { %s792_s18 = smov 128   ;;  %s793_s24 = smov 8  }
 0x30e   :  { %502 = dma.vmem_to_hbm [thread:$0]  %s497_s0, 256, %s1002_s11, [#allocation4], %s792_s18, %s792_s18, %s793_s24  }
 0x30f   :  { %781 = dma.done.wait [#allocation4], 256  }
 0x310   :  { %782 = vsyncadd [#allocation4], 4294967040 }
 0x311   :  { %506 = vsyncpa [#allocation3], 1 }
 0x312   :  { %507 = vsyncpa [#allocation6], 1 }
 0x313   :  { %508 = vsyncpa [#allocation9], 1 }
 0x314   :  { %509 = vsyncpa [#allocation4], 1 }

</bundles_post_ra>
